<compile_context>
chip_gen: v5e
topology: v5e:2x2
jax: 0.10.0
libtpu: 0.0.40
codegen_flags: <defaults>
</compile_context>

<pallas_src>
import math

import jax
import jax.numpy as jnp
from jax.experimental import pallas as pl
from jax.experimental.pallas import tpu as pltpu

BN_EPS = 1e-5
_INV_SQRT2 = 0.7071067811865476


def _round_up(x, m):
    return ((x + m - 1) // m) * m


# ----------------------------- Pallas kernels -------------------------------
def _conv_stats_kernel(p_ref, w_ref, sum_ref, sq_ref):
    """Phase 1: conv matmul + accumulate per-channel sum / sum-of-squares."""
    y = jnp.dot(p_ref[...], w_ref[...], preferred_element_type=jnp.float32)

    @pl.when(pl.program_id(0) == 0)
    def _():
        sum_ref[...] = jnp.zeros_like(sum_ref)
        sq_ref[...] = jnp.zeros_like(sq_ref)

    sum_ref[...] += jnp.sum(y, axis=0, keepdims=True)
    sq_ref[...] += jnp.sum(y * y, axis=0, keepdims=True)


def _conv_bn_gelu_kernel(p_ref, w_ref, scale_ref, shift_ref, o_ref):
    """Phase 2: conv matmul + fused BN affine (scale/shift) + exact erf-GELU."""
    y = jnp.dot(p_ref[...], w_ref[...], preferred_element_type=jnp.float32)
    yh = y * scale_ref[...] + shift_ref[...]          # single FMA epilogue
    o_ref[...] = 0.5 * yh * (1.0 + jax.lax.erf(yh * _INV_SQRT2))


# ------------------------------ stage wrapper --------------------------------
def _patches_nlc(x_nlc):
    """x_nlc: (N, L, C) -> im2col patches (N*L_out, 3*C) for k=3, s=2, p=1.

    Built from strided slices in NLC layout: no gather, no transpose.
    Column order is [tap0(C), tap1(C), tap2(C)].
    """
    N, L, C = x_nlc.shape
    L_out = (L - 1) // 2 + 1
    xp = jnp.pad(x_nlc, ((0, 0), (1, 1), (0, 0)))            # pad L by 1 each side
    taps = [xp[:, t:t + 2 * L_out:2, :] for t in range(3)]   # each (N, L_out, C)
    patches = jnp.concatenate(taps, axis=-1).reshape(N * L_out, 3 * C)
    return patches, L_out


def _stem_stage(x_nlc, w, gamma, beta, compute_dtype, tile_m):
    """One Conv1d(k=3,s=2,p=1) + BatchNorm1d(train) + GELU stage, NLC in/out."""
    N, L, c_in = x_nlc.shape
    c_out = w.shape[0]

    patches, L_out = _patches_nlc(x_nlc)          # (M, K) in x dtype
    M, K = patches.shape

    Cp = _round_up(c_out, 128)                    # lane-dense output channels
    Kp = _round_up(K, 8)                          # sublane-friendly contraction
    TM = min(tile_m, _round_up(M, 8))             # rows per grid step
    Mp = _round_up(M, TM)
    ntiles = Mp // TM

    # Zero-padded, MXU-dtype operands.  Padded rows/cols contribute exact zeros.
    p = jnp.pad(patches, ((0, Mp - M), (0, Kp - K))).astype(compute_dtype)
    wmat = jnp.transpose(w, (2, 1, 0)).reshape(K, c_out)      # rows = (tap, c_in)
    wp = jnp.pad(wmat, ((0, Kp - K), (0, Cp - c_out))).astype(compute_dtype)

    # ---- phase 1: per-channel batch statistics (reduction over the grid) ----
    ssum, ssq = pl.pallas_call(
        _conv_stats_kernel,
        out_shape=(jax.ShapeDtypeStruct((1, Cp), jnp.float32),
                   jax.ShapeDtypeStruct((1, Cp), jnp.float32)),
        grid=(ntiles,),
        in_specs=[
            pl.BlockSpec((TM, Kp), lambda i: (i, 0)),
            pl.BlockSpec((Kp, Cp), lambda i: (0, 0)),
        ],
        out_specs=(
            pl.BlockSpec((1, Cp), lambda i: (0, 0)),   # VMEM-resident accumulator
            pl.BlockSpec((1, Cp), lambda i: (0, 0)),
        ),
        compiler_params=pltpu.CompilerParams(
            dimension_semantics=("arbitrary",)),
    )(p, wp)

    # Biased batch stats over the M real rows (padded rows add exact zeros).
    mean = ssum / M                                        # (1, Cp)
    var = ssq / M - mean * mean                            # (1, Cp), biased
    g_p = jnp.pad(gamma, (0, Cp - c_out)).reshape(1, Cp)   # padded chans: gamma=0
    b_p = jnp.pad(beta, (0, Cp - c_out)).reshape(1, Cp)    # padded chans: beta=0
    scale = (g_p * jax.lax.rsqrt(var + BN_EPS)).astype(jnp.float32)
    shift = (b_p - mean * scale).astype(jnp.float32)

    # ---- phase 2: normalize + GELU, fully parallel over row tiles ----------
    out_p = pl.pallas_call(
        _conv_bn_gelu_kernel,
        out_shape=jax.ShapeDtypeStruct((Mp, Cp), jnp.float32),
        grid=(ntiles,),
        in_specs=[
            pl.BlockSpec((TM, Kp), lambda i: (i, 0)),
            pl.BlockSpec((Kp, Cp), lambda i: (0, 0)),
            pl.BlockSpec((1, Cp), lambda i: (0, 0)),
            pl.BlockSpec((1, Cp), lambda i: (0, 0)),
        ],
        out_specs=pl.BlockSpec((TM, Cp), lambda i: (i, 0)),
        compiler_params=pltpu.CompilerParams(
            dimension_semantics=("parallel",)),     # shards across TCs on v7x
    )(p, wp, scale, shift)

    return out_p[:M, :c_out].reshape(N, L_out, c_out)       # stays NLC


# ------------------------------- module API ----------------------------------
def init_stem_params(key, in_channels, out_channels):
    k1, k2, k3, k4 = jax.random.split(key, 4)
    fan1 = in_channels * 3
    fan2 = out_channels * 3
    bound1 = 1.0 / math.sqrt(fan1)
    bound2 = 1.0 / math.sqrt(fan2)
    return {
        "w1": jax.random.uniform(k1, (out_channels, in_channels, 3),
                                 jnp.float32, -bound1, bound1),
        "b1": jax.random.uniform(k2, (out_channels,), jnp.float32, -bound1, bound1),
        "g1": jnp.ones((out_channels,), jnp.float32),
        "be1": jnp.zeros((out_channels,), jnp.float32),
        "w2": jax.random.uniform(k3, (out_channels, out_channels, 3),
                                 jnp.float32, -bound2, bound2),
        "b2": jax.random.uniform(k4, (out_channels,), jnp.float32, -bound2, bound2),
        "g2": jnp.ones((out_channels,), jnp.float32),
        "be2": jnp.zeros((out_channels,), jnp.float32),
    }


def stem_forward(x, params, *, compute_dtype=jnp.bfloat16, tile_m=512):
    """x: (N, C_in, L) float32 -> (N, C_out, ceil(ceil(L/2)/2)) float32.

    Conv biases b1/b2 are intentionally not used: training-mode BatchNorm
    subtracts the batch mean, which cancels any per-channel constant exactly.
    """
    x_nlc = jnp.transpose(x, (0, 2, 1))                      # NCL -> NLC (once)
    y = _stem_stage(x_nlc, params["w1"], params["g1"], params["be1"],
                    compute_dtype, tile_m)
    y = _stem_stage(y, params["w2"], params["g2"], params["be2"],
                    compute_dtype, tile_m)                   # consumes NLC directly
    return jnp.transpose(y, (0, 2, 1))                       # NLC -> NCL (once)


# ----------------------------- pure-JAX reference ----------------------------
def _ref_stage(x, w, b, g, be):
    y = jax.lax.conv_general_dilated(
        x, w, window_strides=(2,), padding=((1, 1),),
        dimension_numbers=("NCH", "OIH", "NCH"),
        precision=jax.lax.Precision.HIGHEST)
    y = y + b[None, :, None]
    m = y.mean(axis=(0, 2), keepdims=True)
    v = ((y - m) ** 2).mean(axis=(0, 2), keepdims=True)
    yhat = (y - m) / jnp.sqrt(v + BN_EPS) * g[None, :, None] + be[None, :, None]
    return 0.5 * yhat * (1.0 + jax.lax.erf(yhat * _INV_SQRT2))


def stem_ref(x, params):
    y = _ref_stage(x, params["w1"], params["b1"], params["g1"], params["be1"])
    y = _ref_stage(y, params["w2"], params["b2"], params["g2"], params["be2"])
    return y


if __name__ == "__main__":
    key = jax.random.PRNGKey(0)
    kx, kp = jax.random.split(key)

    N, C_IN, C_OUT, L = 2, 4, 8, 64
    x = jax.random.normal(kx, (N, C_IN, L), dtype=jnp.float32)
    params = init_stem_params(kp, C_IN, C_OUT)

    ref = jax.block_until_ready(stem_ref(x, params))

    # Tight numerical check of the kernel structure with an f32 compute path.
    out_f32 = jax.block_until_ready(
        stem_forward(x, params, compute_dtype=jnp.float32))
    assert out_f32.shape == ref.shape == (N, C_OUT, L // 4), (out_f32.shape, ref.shape)
    assert jnp.allclose(out_f32, ref, atol=5e-4, rtol=5e-4), \
        float(jnp.max(jnp.abs(out_f32 - ref)))

    # Default bf16 fast path (MXU-native, half the patch DMA bytes).
    out = jax.block_until_ready(stem_forward(x, params))
    assert out.shape == ref.shape
    assert float(jnp.max(jnp.abs(out - ref))) < 1e-1, \
        float(jnp.max(jnp.abs(out - ref)))

    print("KERNEL_OK")
</pallas_src>

<mosaic_0001>
module attributes {stable_mosaic.version = 11 : i64} {
  func.func @_conv_stats_kernel(%arg0: i32, %arg1: memref<64x16xf32, #tpu.memory_space<vmem>>, %arg2: memref<16x128xf32, #tpu.memory_space<vmem>>, %arg3: memref<1x128xf32, #tpu.memory_space<vmem>>, %arg4: memref<1x128xf32, #tpu.memory_space<vmem>>) attributes {dimension_semantics = [#tpu.dimension_semantics<arbitrary>], iteration_bounds = array<i64: 1>, scalar_prefetch = 0 : i64, scratch_operands = 0 : i64, tpu.core_type = #tpu.core_type<tc>, window_params = [{transform_indices = @transform_0, window_bounds = array<i64: 64, 16>}, {pipeline_mode = #tpu.pipeline_mode<synchronous>, transform_indices = @transform_1, window_bounds = array<i64: 16, 128>}, {pipeline_mode = #tpu.pipeline_mode<synchronous>, transform_indices = @transform_2, window_bounds = array<i64: 1, 128>}, {pipeline_mode = #tpu.pipeline_mode<synchronous>, transform_indices = @transform_3, window_bounds = array<i64: 1, 128>}]} {
    %c0 = arith.constant 0 : index
    %c0_0 = arith.constant 0 : index
    %0 = vector.load %arg1[%c0, %c0_0] : memref<64x16xf32, #tpu.memory_space<vmem>>, vector<64x16xf32>
    %c0_1 = arith.constant 0 : index
    %c0_2 = arith.constant 0 : index
    %1 = vector.load %arg2[%c0_1, %c0_2] : memref<16x128xf32, #tpu.memory_space<vmem>>, vector<16x128xf32>
    %cst = arith.constant dense<0.000000e+00> : vector<64x128xf32>
    %2 = tpu.matmul %0, %1, %cst {dimension_numbers = #tpu.dot_dimension_numbers<[1], [0], [0], [1], [0, 0, 1, 1], [], []>} : vector<64x16xf32>, vector<16x128xf32>, vector<64x128xf32> -> vector<64x128xf32>
    %c0_i32 = arith.constant 0 : i32
    %3 = arith.cmpi eq, %arg0, %c0_i32 : i32
    %4 = arith.extui %3 : i1 to i32
    %c0_i32_3 = arith.constant 0 : i32
    %5 = arith.cmpi ne, %4, %c0_i32_3 : i32
    scf.if %5 {
      %cst_14 = arith.constant 0.000000e+00 : f32
      %17 = vector.broadcast %cst_14 : f32 to vector<1x128xf32>
      %c0_15 = arith.constant 0 : index
      %c0_16 = arith.constant 0 : index
      %18 = vector.load %arg3[%c0_15, %c0_16] : memref<1x128xf32, #tpu.memory_space<vmem>>, vector<1x128xf32>
      tpu.vector_store %arg3[%c0_15, %c0_16], %17 {strides = array<i32>} : memref<1x128xf32, #tpu.memory_space<vmem>>, vector<1x128xf32>,
      %cst_17 = arith.constant 0.000000e+00 : f32
      %19 = vector.broadcast %cst_17 : f32 to vector<1x128xf32>
      %c0_18 = arith.constant 0 : index
      %c0_19 = arith.constant 0 : index
      %20 = vector.load %arg4[%c0_18, %c0_19] : memref<1x128xf32, #tpu.memory_space<vmem>>, vector<1x128xf32>
      tpu.vector_store %arg4[%c0_18, %c0_19], %19 {strides = array<i32>} : memref<1x128xf32, #tpu.memory_space<vmem>>, vector<1x128xf32>,
    } else {
    }
    %c0_4 = arith.constant 0 : index
    %c0_5 = arith.constant 0 : index
    %6 = vector.load %arg3[%c0_4, %c0_5] : memref<1x128xf32, #tpu.memory_space<vmem>>, vector<1x128xf32>
    %cst_6 = arith.constant dense<0.000000e+00> : vector<128xf32>
    %7 = vector.multi_reduction <add>, %2, %cst_6 [0] : vector<64x128xf32> to vector<128xf32>
    %8 = vector.shape_cast %7 : vector<128xf32> to vector<1x128xf32>
    %9 = arith.addf %6, %8 : vector<1x128xf32>
    %c0_7 = arith.constant 0 : index
    %c0_8 = arith.constant 0 : index
    %10 = vector.load %arg3[%c0_7, %c0_8] : memref<1x128xf32, #tpu.memory_space<vmem>>, vector<1x128xf32>
    tpu.vector_store %arg3[%c0_7, %c0_8], %9 {strides = array<i32>} : memref<1x128xf32, #tpu.memory_space<vmem>>, vector<1x128xf32>,
    %c0_9 = arith.constant 0 : index
    %c0_10 = arith.constant 0 : index
    %11 = vector.load %arg4[%c0_9, %c0_10] : memref<1x128xf32, #tpu.memory_space<vmem>>, vector<1x128xf32>
    %12 = arith.mulf %2, %2 : vector<64x128xf32>
    %cst_11 = arith.constant dense<0.000000e+00> : vector<128xf32>
    %13 = vector.multi_reduction <add>, %12, %cst_11 [0] : vector<64x128xf32> to vector<128xf32>
    %14 = vector.shape_cast %13 : vector<128xf32> to vector<1x128xf32>
    %15 = arith.addf %11, %14 : vector<1x128xf32>
    %c0_12 = arith.constant 0 : index
    %c0_13 = arith.constant 0 : index
    %16 = vector.load %arg4[%c0_12, %c0_13] : memref<1x128xf32, #tpu.memory_space<vmem>>, vector<1x128xf32>
    tpu.vector_store %arg4[%c0_12, %c0_13], %15 {strides = array<i32>} : memref<1x128xf32, #tpu.memory_space<vmem>>, vector<1x128xf32>,
    return
  }
  func.func @transform_0(%arg0: i32) -> (i32, i32) {
    %c0_i32 = arith.constant 0 : i32
    %c0_i32_0 = arith.constant 0 : i32
    return %arg0, %c0_i32 : i32, i32
  }
  func.func @transform_1(%arg0: i32) -> (i32, i32) {
    %c0_i32 = arith.constant 0 : i32
    %c0_i32_0 = arith.constant 0 : i32
    %c0_i32_1 = arith.constant 0 : i32
    return %c0_i32, %c0_i32_0 : i32, i32
  }
  func.func @transform_2(%arg0: i32) -> (i32, i32) {
    %c0_i32 = arith.constant 0 : i32
    %c0_i32_0 = arith.constant 0 : i32
    %c0_i32_1 = arith.constant 0 : i32
    return %c0_i32, %c0_i32_0 : i32, i32
  }
  func.func @transform_3(%arg0: i32) -> (i32, i32) {
    %c0_i32 = arith.constant 0 : i32
    %c0_i32_0 = arith.constant 0 : i32
    %c0_i32_1 = arith.constant 0 : i32
    return %c0_i32, %c0_i32_0 : i32, i32
  }
}

</mosaic_0001>

<bundles_post_ra>
// kernel: tpu_custom_call.1
= control target key start
LH: loop header
LB: loop body
LE: loop exit
PB: predicated region body
PF: predicated region fallthrough
CT: control target
= control target key end

     0   :  { %9 = vsyncpa [#allocation3], 0  ;;  %vm25_vm0 = vcmask 130048   ;;  %s305_s0 = inlined_call_operand.vmem [shape: f32[64,16], index: 0, kind: input, shape index: {}]   ;;  %s306_s1 = inlined_call_operand.vmem [shape: f32[16,128], index: 1, kind: input, shape index: {}]   ;;  %s307_s2 = inlined_call_operand.hbm [shape: f32[1,128], index: 2, kind: output, shape index: {0}]   ;;  %s308_s3 = inlined_call_operand.hbm [shape: f32[1,128], index: 3, kind: output, shape index: {1}]  }
   0x1   :  { %v24_v0 = vld [vmem:[%s306_s1 + $0x8] sm:$0xff]  ;;  %v23_v1 = vld [vmem:[%s306_s1] sm:$0xff]  ;;  %v17_v4 = vld [vmem:[%s305_s0 + $0x10] sm:$0xff] }
   0x2   :  { %64 = vmatpush.msra.mxu0 %v24_v0  ;;  %178 = vmatpush.msra.mxu2 %v24_v0  ;;  %v15_v2 = vld [vmem:[%s305_s0] sm:$0xff]  ;;  %v21_v5 = vld [vmem:[%s305_s0 + $0x30] sm:$0xff] }
   0x3   :  { %v19_v3 = vld [vmem:[%s305_s0 + $0x20] sm:$0xff]  ;;  %177 = vmatpush.msra.mxu1 %v24_v0  ;;  %179 = vmatpush.msra.mxu3 %v24_v0 }
   0x4   :  { %65 = vmatpush.msra.mxu0 %v23_v1  ;;  %181 = vmatpush.msra.mxu2 %v23_v1 }
   0x5   :  { %10 = vsyncpa [#allocation5], 0  ;;  %169 = vmatmul.msk.f32.vlgmr.msra.gmra.mxu0 %vm25_vm0, %v15_v2  ;;  %173 = vmatmul.msk.f32.vlgmr.msra.gmra.mxu2 %vm25_vm0, %v19_v3  ;;  %v16_v6 = vld [vmem:[%s305_s0 + $0x8] sm:$0xff]  ;;  %v18_v8 = vld [vmem:[%s305_s0 + $0x18] sm:$0xff]  ;;  %v238_v10 = vmov 0.0   ;;  %s144_s7 = sshll.u32 %s307_s2, 4  ;;  %s145_s7 = int_to_ptr.hbm [resolvable:$true] %s144_s7 }
   0x6   :  { %180 = vmatpush.msra.mxu1 %v23_v1  ;;  %182 = vmatpush.msra.mxu3 %v23_v1  ;;  %v20_v7 = vld [vmem:[%s305_s0 + $0x28] sm:$0xff]  ;;  %v22_v9 = vld [vmem:[%s305_s0 + $0x38] sm:$0xff]  ;;  %95 = vst [vmem:[#allocation2] sm:$0x1] %v238_v10  ;;  %s239_s0 = smov [#allocation2]   ;;  %s240_s8 = smov [#allocation4]  }
   0x7   :  { %171 = vmatmul.msk.f32.vlgmr.msra.gmra.mxu1 %vm25_vm0, %v17_v4  ;;  %175 = vmatmul.msk.f32.vlgmr.msra.gmra.mxu3 %vm25_vm0, %v21_v5  ;;  %96 = vst [vmem:[#allocation4] sm:$0x1] %v238_v10  ;;  %s142_s4 = sshll.u32 %s239_s0, 4  ;;  %s153_s9 = sshll.u32 %s240_s8, 4  ;;  %s143_s4 = int_to_ptr.vmem [resolvable:$true] %s142_s4  ;;  %s154_s9 = int_to_ptr.vmem [resolvable:$true] %s153_s9 }
   0x8   :  { %s155_s12 = sshll.u32 %s308_s3, 4  ;;  %s156_s12 = int_to_ptr.hbm [resolvable:$true] %s155_s12 }
   0xd   :  { %170 = vmatmul.msk.f32.gmra.mxu0 %vm25_vm0, %v16_v6  ;;  %174 = vmatmul.msk.f32.gmra.mxu2 %vm25_vm0, %v20_v7  ;;  %v97_v50 = vld [vmem:[#allocation2] sm:$0x1] }
   0xe   :  { %v113_v53 = vld [vmem:[#allocation4] sm:$0x1] }
   0xf   :  { %172 = vmatmul.msk.f32.gmra.mxu1 %vm25_vm0, %v18_v8  ;;  %176 = vmatmul.msk.f32.gmra.mxu3 %vm25_vm0, %v22_v9 }
  0x82   :  { %v67_v11 = vpop.f32.mrf.mxu0 }
  0x83   :  { %v114_v16 = vmul.f32 %v67_v11, %v67_v11 }
  0x84   :  { %v73_v12 = vpop.f32.mrf.mxu1 }
  0x85   :  { %v116_v20 = vmul.f32 %v73_v12, %v73_v12 }
  0x88   :  { %v79_v13 = vpop.f32.mrf.mxu2 }
  0x89   :  { %v118_v27 = vmul.f32 %v79_v13, %v79_v13 }
  0x8a   :  { %v70_v14 = vpop.f32.mrf.mxu0  ;;  %v85_v15 = vpop.f32.mrf.mxu3 }
  0x8b   :  { %v98_v17 = vadd.f32 %v70_v14, %v67_v11  ;;  %v115_v18 = vmul.f32 %v70_v14, %v70_v14  ;;  %v120_v34 = vmul.f32 %v85_v15, %v85_v15 }
  0x8c   :  { %v76_v19 = vpop.f32.mrf.mxu1 }
  0x8d   :  { %v122_v21 = vadd.f32 %v115_v18, %v114_v16  ;;  %v99_v22 = vadd.f32 %v98_v17, %v73_v12  ;;  %v117_v23 = vmul.f32 %v76_v19, %v76_v19 }
  0x8f   :  { %v100_v24 = vadd.f32 %v99_v22, %v76_v19  ;;  %v123_v25 = vadd.f32 %v122_v21, %v116_v20 }
  0x90   :  { %v82_v26 = vpop.f32.mrf.mxu2 }
  0x91   :  { %v124_v28 = vadd.f32 %v123_v25, %v117_v23  ;;  %v101_v29 = vadd.f32 %v100_v24, %v79_v13  ;;  %v119_v30 = vmul.f32 %v82_v26, %v82_v26 }
  0x92   :  { %v88_v31 = vpop.f32.mrf.mxu3 }
  0x93   :  { %v102_v32 = vadd.f32 %v101_v29, %v82_v26  ;;  %v125_v33 = vadd.f32 %v124_v28, %v118_v27  ;;  %v121_v37 = vmul.f32 %v88_v31, %v88_v31 }
  0x95   :  { %v126_v35 = vadd.f32 %v125_v33, %v119_v30  ;;  %v103_v36 = vadd.f32 %v102_v32, %v85_v15 }
  0x97   :  { %v104_v38 = vadd.f32 %v103_v36, %v88_v31  ;;  %v127_v39 = vadd.f32 %v126_v35, %v120_v34 }
  0x99   :  { %v105_v40 = vrot.slane %v104_v38, 4  ;;  %v128_v41 = vadd.f32 %v127_v39, %v121_v37 }
  0x9b   :  { %v106_v42 = vadd.f32 %v105_v40, %v104_v38  ;;  %v129_v43 = vrot.slane %v128_v41, 4 }
  0x9d   :  { %v107_v44 = vrot.slane %v106_v42, 2  ;;  %v130_v45 = vadd.f32 %v129_v43, %v128_v41 }
  0x9f   :  { %v108_v46 = vadd.f32 %v107_v44, %v106_v42  ;;  %v131_v47 = vrot.slane %v130_v45, 2 }
  0xa1   :  { %v109_v48 = vrot.slane %v108_v46, 1  ;;  %v132_v49 = vadd.f32 %v131_v47, %v130_v45 }
  0xa3   :  { %v110_v51 = vadd.f32 %v109_v48, %v108_v46  ;;  %v133_v52 = vrot.slane %v132_v49, 1 }
  0xa5   :  { %v134_v54 = vadd.f32 %v133_v52, %v132_v49  ;;  %v111_v55 = vadd.f32 %v110_v51, %v97_v50 }
  0xa7   :  { %112 = vst [vmem:[#allocation2] sm:$0x1] %v111_v55  ;;  %v135_v56 = vadd.f32 %v134_v54, %v113_v53 }
  0xa8   :  { %147 = dma.vmem_to_hbm [thread:$0]  %s143_s4, 16, %s145_s7, [#allocation3]  }
  0xa9   :  { %136 = vst [vmem:[#allocation4] sm:$0x1] %v135_v56 }
  0xaa   :  { %158 = dma.vmem_to_hbm [thread:$0]  %s154_s9, 16, %s156_s12, [#allocation5]  }
  0xab   :  { %234 = dma.done.wait [#allocation3], 16  }
  0xac   :  { %235 = vsyncadd [#allocation3], 4294967280 }
  0xad   :  { %236 = dma.done.wait [#allocation5], 16  }
  0xae   :  { %237 = vsyncadd [#allocation5], 4294967280 }
  0xaf   :  { %167 = vsyncpa [#allocation3], 1 }
  0xb0   :  { %168 = vsyncpa [#allocation5], 1 }

</bundles_post_ra>
